<compile_context>
chip_gen: v5e
topology: v5e:2x2
jax: 0.10.0
libtpu: 0.0.40
codegen_flags: <defaults>
</compile_context>

<pallas_src>
import functools

import jax
import jax.numpy as jnp
from jax import lax
from jax.experimental import pallas as pl
from jax.experimental.pallas import tpu as pltpu

_NEG = -1.0e30       # large-negative *finite* masked logit: avoids inf-inf NaNs
_LANES = 128


# --------------------------------------------------------------------------- #
# Kernels
# --------------------------------------------------------------------------- #
def _resident_kernel(scale_i_ref, scale_t_ref, bias_ref, img_ref, txt_ref,
                     out_ref, *, apply_bias):
    """Grid = (row_tiles,).  Text matrix + per-column scale/bias are resident."""
    i = pl.program_id(0)
    tile_m = img_ref.shape[0]

    # MXU matmul in the input dtype, f32 accumulation.
    dots = lax.dot_general(img_ref[...], txt_ref[...],
                           (((1,), (1,)), ((), ())),
                           preferred_element_type=jnp.float32)       # [TM, Bp]
    # Hoisted scales: rows carry inv_norm(img)/temperature, cols inv_norm(txt).
    sim = dots * scale_i_ref[...] * scale_t_ref[...]
    if apply_bias:                                       # static python bool
        sim = sim + bias_ref[...]                        # mask padded columns

    # Positives = diag(sim) for this row tile (global row = i*TM + r).
    row_g = i * tile_m + lax.broadcasted_iota(jnp.int32, sim.shape, 0)
    col_g = lax.broadcasted_iota(jnp.int32, sim.shape, 1)
    pos = jnp.sum(jnp.where(row_g == col_g, sim, 0.0),
                  axis=-1, keepdims=True)                            # [TM, 1]

    # Row-wise logsumexp over the full (resident) column range.
    row_max = jnp.max(sim, axis=-1, keepdims=True)                   # [TM, 1]
    lse = row_max + jnp.log(jnp.sum(jnp.exp(sim - row_max),
                                    axis=-1, keepdims=True))

    out_ref[...] = lse - pos


def _streaming_kernel(scale_i_ref, scale_t_ref, bias_ref, img_ref, txt_ref,
                      out_ref, m_sc, l_sc, pos_sc, *, apply_bias):
    """Grid = (row_tiles, col_tiles); online logsumexp along the column axis.

    m_sc / l_sc are lane-dense (tile, 128): lane k tracks the partial max /
    partial sum over global columns c with c % 128 == k, so per-step updates are
    pure VPU/EUP work; the single cross-lane combine happens in the finalize.
    pos_sc is written on the diagonal step (j == i) and read at j == nj-1;
    this relies on the sequential, in-order execution of the "arbitrary" column
    axis (guaranteed by today's Mosaic grid execution).
    """
    i = pl.program_id(0)
    j = pl.program_id(1)
    nj = pl.num_programs(1)

    @pl.when(j == 0)
    def _init():
        m_sc[...] = jnp.full_like(m_sc, _NEG)
        l_sc[...] = jnp.zeros_like(l_sc)
        pos_sc[...] = jnp.zeros_like(pos_sc)

    dots = lax.dot_general(img_ref[...], txt_ref[...],
                           (((1,), (1,)), ((), ())),
                           preferred_element_type=jnp.float32)        # [T, T]
    sim = dots * scale_i_ref[...] * scale_t_ref[...]
    if apply_bias:
        sim = sim + bias_ref[...]

    @pl.when(j == i)
    def _positives():
        rr = lax.broadcasted_iota(jnp.int32, sim.shape, 0)
        cc = lax.broadcasted_iota(jnp.int32, sim.shape, 1)
        pos_sc[...] = jnp.sum(jnp.where(rr == cc, sim, 0.0),
                              axis=-1, keepdims=True)

    # Lane-grouped online logsumexp update (static, lane-aligned slices only).
    nq = sim.shape[1] // _LANES
    m_prev = m_sc[...]
    cmax = sim[:, 0:_LANES]
    for q in range(1, nq):
        cmax = jnp.maximum(cmax, sim[:, q * _LANES:(q + 1) * _LANES])
    m_new = jnp.maximum(m_prev, cmax)
    alpha = jnp.exp(m_prev - m_new)
    csum = jnp.exp(sim[:, 0:_LANES] - m_new)
    for q in range(1, nq):
        csum = csum + jnp.exp(sim[:, q * _LANES:(q + 1) * _LANES] - m_new)
    l_sc[...] = alpha * l_sc[...] + csum
    m_sc[...] = m_new

    @pl.when(j == nj - 1)
    def _finalize():
        m = m_sc[...]
        l = l_sc[...]
        row_m = jnp.max(m, axis=-1, keepdims=True)                    # [T, 1]
        s = jnp.sum(jnp.exp(m - row_m) * l, axis=-1, keepdims=True)   # [T, 1]
        out_ref[...] = row_m + jnp.log(s) - pos_sc[...]


# --------------------------------------------------------------------------- #
# Wrapper
# --------------------------------------------------------------------------- #
def _round_up(x, m):
    return (x + m - 1) // m * m


def _pick_tile(b_pad):
    for t in (512, 256, 128):
        if b_pad % t == 0:
            return t
    return 128  # unreachable: b_pad is always a multiple of 128


def _vmem_capacity_bytes():
    try:
        return int(pltpu.get_tpu_info().vmem_capacity_bytes)
    except Exception:
        return 64 * 1024 * 1024   # conservative default (v7x per-core VMEM)


def contrastive_loss(image_embeds, text_embeds, margin=1.0, temperature=1.0,
                     *, matmul_dtype=None, tile=None, force_streaming=False):
    """Pallas forward of the PyTorch ContrastiveLoss module.  Inputs: [B, D]."""
    assert image_embeds.ndim == 2 and image_embeds.shape == text_embeds.shape
    B, D = image_embeds.shape

    if matmul_dtype is not None:
        image_embeds = image_embeds.astype(matmul_dtype)
        text_embeds = text_embeds.astype(matmul_dtype)

    b_pad = _round_up(max(B, 1), 128)
    if tile is None:
        tile = _pick_tile(b_pad)
    assert b_pad % tile == 0 and tile % 128 == 0, (b_pad, tile)
    n_row = b_pad // tile
    pad = b_pad - B

    # --- hoisted per-row scales: computed ONCE, outside the (i, j) grid -------
    img32 = image_embeds.astype(jnp.float32)
    txt32 = text_embeds.astype(jnp.float32)
    # 1/max(||x||, 1e-12) == rsqrt(max(||x||^2, 1e-24))  (matches F.normalize).
    inv_i = lax.rsqrt(jnp.maximum(jnp.sum(img32 * img32, axis=-1), 1e-24))
    inv_t = lax.rsqrt(jnp.maximum(jnp.sum(txt32 * txt32, axis=-1), 1e-24))
    scale_i = jnp.pad(inv_i * (1.0 / float(temperature)), (0, pad))
    scale_i = scale_i.reshape(b_pad, 1).astype(jnp.float32)
    scale_t = jnp.pad(inv_t, (0, pad)).reshape(1, b_pad).astype(jnp.float32)
    col_bias = jnp.where(jnp.arange(b_pad) < B, 0.0, _NEG)
    col_bias = col_bias.reshape(1, b_pad).astype(jnp.float32)

    img_p = jnp.pad(image_embeds, ((0, pad), (0, 0))) if pad else image_embeds
    txt_p = jnp.pad(text_embeds, ((0, pad), (0, 0))) if pad else text_embeds

    # --- VMEM budget / residency decision -------------------------------------
    itemsize = jnp.dtype(img_p.dtype).itemsize
    vmem_cap = max(32 * 1024 * 1024,
                   min(_vmem_capacity_bytes() * 3 // 4, 96 * 1024 * 1024))
    resident_bytes = (2 * b_pad * D * itemsize      # resident text (2 buffers, worst case)
                      + 2 * tile * D * itemsize     # double-buffered image row tiles
                      + 3 * tile * b_pad * 4        # sim + exp temporaries (f32)
                      + 8 * b_pad * 4 + (1 << 20))  # scales / bias / out + slack
    use_resident = (not force_streaming) and resident_bytes <= vmem_cap - (8 << 20)

    out_shape = jax.ShapeDtypeStruct((b_pad, 1), jnp.float32)

    if use_resident:
        kernel = functools.partial(_resident_kernel, apply_bias=bool(pad))
        per_row = pl.pallas_call(
            kernel,
            out_shape=out_shape,
            grid_spec=pltpu.PrefetchScalarGridSpec(
                num_scalar_prefetch=0,
                grid=(n_row,),
                in_specs=[
                    pl.BlockSpec((tile, 1), lambda i: (i, 0)),        # scale_i
                    pl.BlockSpec((1, b_pad), lambda i: (0, 0)),       # scale_t (resident)
                    pl.BlockSpec((1, b_pad), lambda i: (0, 0)),       # col bias (resident)
                    pl.BlockSpec((tile, D), lambda i: (i, 0)),        # image row tile
                    pl.BlockSpec((b_pad, D), lambda i: (0, 0)),       # text (VMEM-resident)
                ],
                out_specs=pl.BlockSpec((tile, 1), lambda i: (i, 0)),
            ),
            compiler_params=pltpu.CompilerParams(
                # TODO(synk): on v7x verify both TensorCores are used for this axis;
                # switch to pltpu.CORE_PARALLEL if the profile shows one core idle.
                dimension_semantics=("parallel",),
                vmem_limit_bytes=int(vmem_cap),
            ),
        )(scale_i, scale_t, col_bias, img_p, txt_p)
    else:
        kernel = functools.partial(_streaming_kernel, apply_bias=bool(pad))
        per_row = pl.pallas_call(
            kernel,
            out_shape=out_shape,
            grid_spec=pltpu.PrefetchScalarGridSpec(
                num_scalar_prefetch=0,
                grid=(n_row, n_row),
                in_specs=[
                    pl.BlockSpec((tile, 1), lambda i, j: (i, 0)),     # scale_i
                    pl.BlockSpec((1, tile), lambda i, j: (0, j)),     # scale_t
                    pl.BlockSpec((1, tile), lambda i, j: (0, j)),     # col bias
                    pl.BlockSpec((tile, D), lambda i, j: (i, 0)),     # image rows (fixed in j)
                    # NOTE: for small D (<=256) pipeline_mode=pl.Buffered(3) on this
                    # spec can hide the per-step text DMA; left at default depth.
                    pl.BlockSpec((tile, D), lambda i, j: (j, 0)),     # text stream
                ],
                out_specs=pl.BlockSpec((tile, 1), lambda i, j: (i, 0)),
                scratch_shapes=[
                    pltpu.VMEM((tile, _LANES), jnp.float32),  # running max (lane-dense)
                    pltpu.VMEM((tile, _LANES), jnp.float32),  # running sum (lane-dense)
                    pltpu.VMEM((tile, 1), jnp.float32),       # positives
                ],
            ),
            compiler_params=pltpu.CompilerParams(
                dimension_semantics=("parallel", "arbitrary"),
                vmem_limit_bytes=int(vmem_cap),
            ),
        )(scale_i, scale_t, col_bias, img_p, txt_p)

    # logsumexp(sim - margin) == logsumexp(sim) - margin: folded once, here.
    return jnp.mean(per_row[:B, 0]) - margin


# --------------------------------------------------------------------------- #
# Pure-JAX reference (mirrors the PyTorch module) + tests
# --------------------------------------------------------------------------- #
def _reference_loss(image_embeds, text_embeds, margin=1.0, temperature=1.0):
    def l2n(x):
        return x / jnp.maximum(jnp.linalg.norm(x, axis=-1, keepdims=True), 1e-12)
    i = l2n(image_embeds.astype(jnp.float32))
    t = l2n(text_embeds.astype(jnp.float32))
    denom = jnp.maximum(
        jnp.linalg.norm(i, axis=-1)[:, None] * jnp.linalg.norm(t, axis=-1)[None, :],
        1e-8)
    sim = (i @ t.T) / denom / temperature
    pos = jnp.diag(sim)
    return jnp.mean(jax.nn.logsumexp(sim - margin, axis=-1) - pos)


if __name__ == "__main__":
    key = jax.random.PRNGKey(0)
    ks = jax.random.split(key, 8)

    # Case 1: tiny batch, resident path, heavy padding (B=8 -> B_pad=128).
    img = jax.random.normal(ks[0], (8, 128), dtype=jnp.float32)
    txt = jax.random.normal(ks[1], (8, 128), dtype=jnp.float32)
    got = jax.block_until_ready(contrastive_loss(img, txt))
    ref = _reference_loss(img, txt)
    assert jnp.allclose(got, ref, atol=1e-4, rtol=1e-4), (got, ref)

    # Case 2: non-aligned batch + non-default margin/temperature (resident).
    img = jax.random.normal(ks[2], (40, 256), dtype=jnp.float32)
    txt = jax.random.normal(ks[3], (40, 256), dtype=jnp.float32)
    got = jax.block_until_ready(
        contrastive_loss(img, txt, margin=0.5, temperature=0.7))
    ref = _reference_loss(img, txt, margin=0.5, temperature=0.7)
    assert jnp.allclose(got, ref, atol=1e-4, rtol=1e-4), (got, ref)

    # Case 3: streaming fallback, 2x2 grid: online logsumexp, diagonal tiles,
    # padded columns.
    img = jax.random.normal(ks[4], (200, 128), dtype=jnp.float32)
    txt = jax.random.normal(ks[5], (200, 128), dtype=jnp.float32)
    got = jax.block_until_ready(
        contrastive_loss(img, txt, margin=0.3, temperature=1.3,
                         tile=128, force_streaming=True))
    ref = _reference_loss(img, txt, margin=0.3, temperature=1.3)
    assert jnp.allclose(got, ref, atol=1e-4, rtol=1e-4), (got, ref)

    # Case 4: bf16 MXU feed (f32 accumulate), no padding, compared against the
    # reference evaluated on the same bf16-cast inputs.
    img = jax.random.normal(ks[6], (128, 256), dtype=jnp.float32)
    txt = jax.random.normal(ks[7], (128, 256), dtype=jnp.float32)
    got = jax.block_until_ready(
        contrastive_loss(img, txt, matmul_dtype=jnp.bfloat16))
    ref = _reference_loss(img.astype(jnp.bfloat16), txt.astype(jnp.bfloat16))
    assert jnp.allclose(got, ref, atol=5e-3, rtol=5e-3), (got, ref)

    print("KERNEL_OK")
</pallas_src>

<mosaic_0001>
module attributes {stable_mosaic.version = 11 : i64} {
  func.func @_resident_kernel(%arg0: i32, %arg1: memref<128x1xf32, #tpu.memory_space<vmem>>, %arg2: memref<1x128xf32, #tpu.memory_space<vmem>>, %arg3: memref<1x128xf32, #tpu.memory_space<vmem>>, %arg4: memref<128x128xf32, #tpu.memory_space<vmem>>, %arg5: memref<128x128xf32, #tpu.memory_space<vmem>>, %arg6: memref<128x1xf32, #tpu.memory_space<vmem>>) attributes {dimension_semantics = [#tpu.dimension_semantics<parallel>], iteration_bounds = array<i64: 1>, scalar_prefetch = 0 : i64, scratch_operands = 0 : i64, tpu.core_type = #tpu.core_type<tc>, window_params = [{transform_indices = @transform_0, window_bounds = array<i64: 128, 1>}, {pipeline_mode = #tpu.pipeline_mode<synchronous>, transform_indices = @transform_1, window_bounds = array<i64: 1, 128>}, {pipeline_mode = #tpu.pipeline_mode<synchronous>, transform_indices = @transform_2, window_bounds = array<i64: 1, 128>}, {transform_indices = @transform_3, window_bounds = array<i64: 128, 128>}, {pipeline_mode = #tpu.pipeline_mode<synchronous>, transform_indices = @transform_4, window_bounds = array<i64: 128, 128>}, {transform_indices = @transform_5, window_bounds = array<i64: 128, 1>}]} {
    %c0 = arith.constant 0 : index
    %c0_0 = arith.constant 0 : index
    %0 = vector.load %arg4[%c0, %c0_0] : memref<128x128xf32, #tpu.memory_space<vmem>>, vector<128x128xf32>
    %c0_1 = arith.constant 0 : index
    %c0_2 = arith.constant 0 : index
    %1 = vector.load %arg5[%c0_1, %c0_2] : memref<128x128xf32, #tpu.memory_space<vmem>>, vector<128x128xf32>
    %cst = arith.constant dense<0.000000e+00> : vector<128x128xf32>
    %2 = tpu.matmul %0, %1, %cst {dimension_numbers = #tpu.dot_dimension_numbers<[1], [1], [0], [0], [0, 0, 1, 0], [], []>} : vector<128x128xf32>, vector<128x128xf32>, vector<128x128xf32> -> vector<128x128xf32>
    %c0_3 = arith.constant 0 : index
    %c0_4 = arith.constant 0 : index
    %3 = vector.load %arg1[%c0_3, %c0_4] : memref<128x1xf32, #tpu.memory_space<vmem>>, vector<128x1xf32>
    %4 = vector.broadcast %3 : vector<128x1xf32> to vector<128x128xf32>
    %5 = arith.mulf %2, %4 : vector<128x128xf32>
    %c0_5 = arith.constant 0 : index
    %c0_6 = arith.constant 0 : index
    %6 = vector.load %arg2[%c0_5, %c0_6] : memref<1x128xf32, #tpu.memory_space<vmem>>, vector<1x128xf32>
    %7 = vector.broadcast %6 : vector<1x128xf32> to vector<128x128xf32>
    %8 = arith.mulf %5, %7 : vector<128x128xf32>
    %c0_7 = arith.constant 0 : index
    %c0_8 = arith.constant 0 : index
    %9 = vector.load %arg3[%c0_7, %c0_8] : memref<1x128xf32, #tpu.memory_space<vmem>>, vector<1x128xf32>
    %10 = vector.broadcast %9 : vector<1x128xf32> to vector<128x128xf32>
    %11 = arith.addf %8, %10 : vector<128x128xf32>
    %c128_i32 = arith.constant 128 : i32
    %12 = arith.muli %arg0, %c128_i32 : i32
    %13 = tpu.iota {dimensions = array<i32: 0>} : vector<128x128xi32>
    %14 = vector.broadcast %12 : i32 to vector<128x128xi32>
    %15 = arith.addi %14, %13 : vector<128x128xi32>
    %16 = tpu.iota {dimensions = array<i32: 1>} : vector<128x128xi32>
    %17 = arith.cmpi eq, %15, %16 : vector<128x128xi32>
    %cst_9 = arith.constant 0.000000e+00 : f32
    %18 = vector.broadcast %cst_9 : f32 to vector<128x128xf32>
    %19 = arith.select %17, %11, %18 : vector<128x128xi1>, vector<128x128xf32>
    %cst_10 = arith.constant dense<0.000000e+00> : vector<128xf32>
    %20 = vector.multi_reduction <add>, %19, %cst_10 [1] : vector<128x128xf32> to vector<128xf32>
    %21 = vector.shape_cast %20 : vector<128xf32> to vector<128x1xf32>
    %cst_11 = arith.constant dense<0xFF800000> : vector<128xf32>
    %22 = vector.multi_reduction <maximumf>, %11, %cst_11 [1] : vector<128x128xf32> to vector<128xf32>
    %23 = vector.shape_cast %22 : vector<128xf32> to vector<128x1xf32>
    %24 = vector.broadcast %23 : vector<128x1xf32> to vector<128x128xf32>
    %25 = arith.subf %11, %24 : vector<128x128xf32>
    %26 = math.exp %25 : vector<128x128xf32>
    %cst_12 = arith.constant dense<0.000000e+00> : vector<128xf32>
    %27 = vector.multi_reduction <add>, %26, %cst_12 [1] : vector<128x128xf32> to vector<128xf32>
    %28 = vector.shape_cast %27 : vector<128xf32> to vector<128x1xf32>
    %29 = math.log %28 : vector<128x1xf32>
    %30 = arith.addf %23, %29 : vector<128x1xf32>
    %31 = arith.subf %30, %21 : vector<128x1xf32>
    %c0_13 = arith.constant 0 : index
    %c0_14 = arith.constant 0 : index
    %32 = vector.load %arg6[%c0_13, %c0_14] : memref<128x1xf32, #tpu.memory_space<vmem>>, vector<128x1xf32>
    tpu.vector_store %arg6[%c0_13, %c0_14], %31 {strides = array<i32>} : memref<128x1xf32, #tpu.memory_space<vmem>>, vector<128x1xf32>,
    return
  }
  func.func @transform_0(%arg0: i32) -> (i32, i32) {
    %c0_i32 = arith.constant 0 : i32
    %c0_i32_0 = arith.constant 0 : i32
    return %arg0, %c0_i32 : i32, i32
  }
  func.func @transform_1(%arg0: i32) -> (i32, i32) {
    %c0_i32 = arith.constant 0 : i32
    %c0_i32_0 = arith.constant 0 : i32
    %c0_i32_1 = arith.constant 0 : i32
    return %c0_i32, %c0_i32_0 : i32, i32
  }
  func.func @transform_2(%arg0: i32) -> (i32, i32) {
    %c0_i32 = arith.constant 0 : i32
    %c0_i32_0 = arith.constant 0 : i32
    %c0_i32_1 = arith.constant 0 : i32
    return %c0_i32, %c0_i32_0 : i32, i32
  }
  func.func @transform_3(%arg0: i32) -> (i32, i32) {
    %c0_i32 = arith.constant 0 : i32
    %c0_i32_0 = arith.constant 0 : i32
    return %arg0, %c0_i32 : i32, i32
  }
  func.func @transform_4(%arg0: i32) -> (i32, i32) {
    %c0_i32 = arith.constant 0 : i32
    %c0_i32_0 = arith.constant 0 : i32
    %c0_i32_1 = arith.constant 0 : i32
    return %c0_i32, %c0_i32_0 : i32, i32
  }
  func.func @transform_5(%arg0: i32) -> (i32, i32) {
    %c0_i32 = arith.constant 0 : i32
    %c0_i32_0 = arith.constant 0 : i32
    return %arg0, %c0_i32 : i32, i32
  }
}

</mosaic_0001>

<bundles_post_ra>
// kernel: tpu_custom_call.1
= control target key start
LH: loop header
LB: loop body
LE: loop exit
PB: predicated region body
PF: predicated region fallthrough
CT: control target
= control target key end

     0   :  { %10 = vsyncpa [#allocation3], 0  ;;  %s731_s21 = smov [#allocation2]   ;;  %s732_s23 = smov 128   ;;  %s1228_s0 = inlined_call_operand.vmem [shape: f32[128,1], index: 0, kind: input, shape index: {}]   ;;  %s1229_s1 = inlined_call_operand.vmem [shape: f32[1,128], index: 1, kind: input, shape index: {}]   ;;  %s1230_s2 = inlined_call_operand.vmem [shape: f32[1,128], index: 2, kind: input, shape index: {}]   ;;  %s1231_s3 = inlined_call_operand.vmem [shape: f32[128,128], index: 3, kind: input, shape index: {}]   ;;  %s1232_s4 = inlined_call_operand.hbm [shape: f32[128,128], index: 4, kind: input, shape index: {}]   ;;  %s1233_s5 = inlined_call_operand.vmem [shape: f32[128,1], index: 5, kind: output, shape index: {}]  }
   0x1   :  { %s23_s20 = sshll.u32 %s1232_s4, 4  ;;  %s25_s22 = sshll.u32 %s731_s21, 4  ;;  %s24_s20 = int_to_ptr.hbm [resolvable:$true] %s23_s20  ;;  %s26_s22 = int_to_ptr.vmem [resolvable:$true] %s25_s22 }
   0x2   :  { %s733_s24 = smov 8  }
   0x3   :  { %31 = dma.hbm_to_vmem [thread:$0]  %s24_s20, 2048, %s26_s22, [#allocation3], %s732_s23, %s732_s23, %s733_s24  }
   0x4   :  { %729 = dma.done.wait [#allocation3], 2048  }
   0x5   :  { %730 = vsyncadd [#allocation3], 4294965248  ;;  %v734_v0 = vmov 0   ;;  %v67_v1 = vld [vmem:[#allocation2 + $0x78] sm:$0xff]  ;;  %v133_v2 = vld [vmem:[%s1228_s0] sm:$0xff]  ;;  %v286_v54 = vlaneseq }
   0x6   :  { %636 = vset.pattern.permute.xlu0 %v734_v0  ;;  %637 = vset.pattern.permute.xlu1 %v734_v0  ;;  %v66_v3 = vld [vmem:[#allocation2 + $0x70] sm:$0xff]  ;;  %v65_v4 = vld [vmem:[#allocation2 + $0x68] sm:$0xff]  ;;  %v64_v6 = vld [vmem:[#allocation2 + $0x60] sm:$0xff] }
   0x7   :  { %638 = vset.pattern.permute.xlu2 %v734_v0  ;;  %68 = vmatpush.xpose.msra.mxu0 %v67_v1  ;;  %v134_v5 = vld [vmem:[%s1228_s0 + $0x8] sm:$0xff]  ;;  %v135_v7 = vld [vmem:[%s1228_s0 + $0x10] sm:$0xff]  ;;  %v63_v8 = vld [vmem:[#allocation2 + $0x58] sm:$0xff]  ;;  %v868_v56 = vshrl.u32 %v286_v54, 7  ;;  %v870_v57 = vand.u32 127, %v286_v54 }
   0x8   :  { %584 = vmatpush.xpose.msra.mxu1 %v67_v1  ;;  %585 = vmatpush.xpose.msra.mxu2 %v67_v1  ;;  %v139_v9 = vld [vmem:[%s1228_s0 + $0x30] sm:$0xff]  ;;  %v136_v11 = vld [vmem:[%s1228_s0 + $0x18] sm:$0xff]  ;;  %v61_v12 = vld [vmem:[#allocation2 + $0x48] sm:$0xff] }
   0x9   :  { %586 = vmatpush.xpose.msra.mxu3 %v67_v1  ;;  %151 = vperm.xlu0 %636, %v133_v2   ;;  %v62_v10 = vld [vmem:[#allocation2 + $0x50] sm:$0xff]  ;;  %v142_v13 = vld [vmem:[%s1228_s0 + $0x48] sm:$0xff]  ;;  %v60_v14 = vld [vmem:[#allocation2 + $0x40] sm:$0xff]  ;;  %v873_v58 = vadd.s32 112, %v868_v56  ;;  %vm322_vm1 = vcmp.eq.s32.totalorder %v868_v56, %v870_v57 }
   0xa   :  { %161 = vperm.xlu1 %637, %v135_v7   ;;  %v140_v15 = vld [vmem:[%s1228_s0 + $0x38] sm:$0xff]  ;;  %v145_v17 = vld [vmem:[%s1228_s0 + $0x60] sm:$0xff]  ;;  %v143_v19 = vld [vmem:[%s1228_s0 + $0x50] sm:$0xff]  ;;  %v895_v7 = vadd.s32 120, %v868_v56 }
   0xb   :  { %69 = vmatpush.xpose.msra.mxu0 %v66_v3  ;;  %v59_v16 = vld [vmem:[#allocation2 + $0x38] sm:$0xff]  ;;  %v137_v18 = vld [vmem:[%s1228_s0 + $0x20] sm:$0xff]  ;;  %v58_v20 = vld [vmem:[#allocation2 + $0x30] sm:$0xff]  ;;  %vm336_vm0 = vcmp.eq.s32.totalorder %v873_v58, %v870_v57 }
   0xc   :  { %587 = vmatpush.xpose.msra.mxu1 %v66_v3  ;;  %588 = vmatpush.xpose.msra.mxu2 %v66_v3  ;;  %v57_v21 = vld [vmem:[#allocation2 + $0x28] sm:$0xff]  ;;  %v148_v22 = vld [vmem:[%s1228_s0 + $0x78] sm:$0xff]  ;;  %v56_v25 = vld [vmem:[#allocation2 + $0x20] sm:$0xff]  ;;  %vm337_vm3 = vcmp.eq.s32.totalorder %v895_v7, %v870_v57 }
   0xd   :  { %589 = vmatpush.xpose.msra.mxu3 %v66_v3  ;;  %171 = vperm.xlu2 %638, %v137_v18   ;;  %v138_v23 = vld [vmem:[%s1228_s0 + $0x28] sm:$0xff]  ;;  %v55_v26 = vld [vmem:[#allocation2 + $0x18] sm:$0xff]  ;;  %v141_v27 = vld [vmem:[%s1228_s0 + $0x40] sm:$0xff] }
   0xe   :  { %v146_v24 = vld [vmem:[%s1228_s0 + $0x68] sm:$0xff]  ;;  %v54_v28 = vld [vmem:[#allocation2 + $0x10] sm:$0xff]  ;;  %v144_v30 = vld [vmem:[%s1228_s0 + $0x58] sm:$0xff] }
   0xf   :  { %70 = vmatpush.xpose.msra.mxu0 %v65_v4  ;;  %v53_v29 = vld [vmem:[#allocation2 + $0x8] sm:$0xff]  ;;  %v52_v31 = vld [vmem:[#allocation2] sm:$0xff]  ;;  %v147_v36 = vld [vmem:[%s1228_s0 + $0x70] sm:$0xff] }
  0x10   :  { %590 = vmatpush.xpose.msra.mxu1 %v65_v4  ;;  %591 = vmatpush.xpose.msra.mxu2 %v65_v4  ;;  %v36_v32 = vld [vmem:[%s1231_s3] sm:$0xff]  ;;  %v37_v37 = vld [vmem:[%s1231_s3 + $0x8] sm:$0xff]  ;;  %v38_v41 = vld [vmem:[%s1231_s3 + $0x10] sm:$0xff] }
  0x11   :  { %592 = vmatpush.xpose.msra.mxu3 %v65_v4  ;;  %156 = vperm.xlu0 %636, %v134_v5   ;;  %v40_v33 = vld [vmem:[%s1231_s3 + $0x20] sm:$0xff]  ;;  %v41_v38 = vld [vmem:[%s1231_s3 + $0x28] sm:$0xff]  ;;  %v42_v42 = vld [vmem:[%s1231_s3 + $0x30] sm:$0xff] }
  0x12   :  { %166 = vperm.xlu1 %637, %v136_v11   ;;  %v44_v34 = vld [vmem:[%s1231_s3 + $0x40] sm:$0xff]  ;;  %v45_v39 = vld [vmem:[%s1231_s3 + $0x48] sm:$0xff]  ;;  %v46_v43 = vld [vmem:[%s1231_s3 + $0x50] sm:$0xff] }
  0x13   :  { %71 = vmatpush.xpose.msra.mxu0 %v64_v6  ;;  %v48_v35 = vld [vmem:[%s1231_s3 + $0x60] sm:$0xff]  ;;  %v49_v40 = vld [vmem:[%s1231_s3 + $0x68] sm:$0xff]  ;;  %v50_v44 = vld [vmem:[%s1231_s3 + $0x70] sm:$0xff] }
  0x14   :  { %593 = vmatpush.xpose.msra.mxu1 %v64_v6  ;;  %594 = vmatpush.xpose.msra.mxu2 %v64_v6  ;;  %v39_v45 = vld [vmem:[%s1231_s3 + $0x18] sm:$0xff]  ;;  %v882_v61 = vld [vmem:[%s1229_s1] ss:$0 sm:$0xff] }
  0x15   :  { %595 = vmatpush.xpose.msra.mxu3 %v64_v6  ;;  %176 = vperm.xlu2 %638, %v138_v23   ;;  %v43_v46 = vld [vmem:[%s1231_s3 + $0x38] sm:$0xff]  ;;  %v887_v2 = vld [vmem:[%s1230_s2] ss:$0 sm:$0xff]  ;;  %v892_v6 = vadd.s32 88, %v868_v56 }
  0x16   :  { %v47_v47 = vld [vmem:[%s1231_s3 + $0x58] sm:$0xff] }
  0x17   :  { %72 = vmatpush.xpose.msra.mxu0 %v63_v8  ;;  %v51_v48 = vld [vmem:[%s1231_s3 + $0x78] sm:$0xff]  ;;  %vm333_vm2 = vcmp.eq.s32.totalorder %v892_v6, %v870_v57 }
  0x18   :  { %596 = vmatpush.xpose.msra.mxu1 %v63_v8  ;;  %597 = vmatpush.xpose.msra.mxu2 %v63_v8 }
  0x19   :  { %598 = vmatpush.xpose.msra.mxu3 %v63_v8  ;;  %181 = vperm.xlu0 %636, %v139_v9  }
  0x1a   :  { %186 = vperm.xlu1 %637, %v140_v15   ;;  %v299_v15 = vadd.s32 96, %v868_v56 }
  0x1b   :  { %73 = vmatpush.xpose.msra.mxu0 %v62_v10 }
  0x1c   :  { %599 = vmatpush.xpose.msra.mxu1 %v62_v10  ;;  %600 = vmatpush.xpose.msra.mxu2 %v62_v10  ;;  %vm334_vm4 = vcmp.eq.s32.totalorder %v299_v15, %v870_v57 }
  0x1d   :  { %601 = vmatpush.xpose.msra.mxu3 %v62_v10  ;;  %191 = vperm.xlu2 %638, %v141_v27  }
  0x1f   :  { %74 = vmatpush.xpose.msra.mxu0 %v61_v12 }
  0x20   :  { %602 = vmatpush.xpose.msra.mxu1 %v61_v12  ;;  %603 = vmatpush.xpose.msra.mxu2 %v61_v12 }
  0x21   :  { %604 = vmatpush.xpose.msra.mxu3 %v61_v12  ;;  %196 = vperm.xlu0 %636, %v142_v13  }
  0x22   :  { %201 = vperm.xlu1 %637, %v143_v19  }
  0x23   :  { %75 = vmatpush.xpose.msra.mxu0 %v60_v14 }
  0x24   :  { %605 = vmatpush.xpose.msra.mxu1 %v60_v14  ;;  %606 = vmatpush.xpose.msra.mxu2 %v60_v14 }
  0x25   :  { %607 = vmatpush.xpose.msra.mxu3 %v60_v14  ;;  %206 = vperm.xlu2 %638, %v144_v30  }
  0x27   :  { %76 = vmatpush.xpose.msra.mxu0 %v59_v16 }
  0x28   :  { %608 = vmatpush.xpose.msra.mxu1 %v59_v16  ;;  %609 = vmatpush.xpose.msra.mxu2 %v59_v16 }
  0x29   :  { %610 = vmatpush.xpose.msra.mxu3 %v59_v16  ;;  %211 = vperm.xlu0 %636, %v145_v17   ;;  %v291_v17 = vadd.s32 32, %v868_v56 }
  0x2a   :  { %216 = vperm.xlu1 %637, %v146_v24  }
  0x2b   :  { %77 = vmatpush.xpose.msra.mxu0 %v58_v20  ;;  %vm326_vm5 = vcmp.eq.s32.totalorder %v291_v17, %v870_v57 }
  0x2c   :  { %611 = vmatpush.xpose.msra.mxu1 %v58_v20  ;;  %612 = vmatpush.xpose.msra.mxu2 %v58_v20 }
  0x2d   :  { %613 = vmatpush.xpose.msra.mxu3 %v58_v20  ;;  %221 = vperm.xlu2 %638, %v147_v36  }
  0x2f   :  { %78 = vmatpush.xpose.msra.mxu0 %v57_v21 }
  0x30   :  { %614 = vmatpush.xpose.msra.mxu1 %v57_v21  ;;  %615 = vmatpush.xpose.msra.mxu2 %v57_v21 }
  0x31   :  { %616 = vmatpush.xpose.msra.mxu3 %v57_v21  ;;  %226 = vperm.xlu0 %636, %v148_v22  }
  0x33   :  { %79 = vmatpush.xpose.msra.mxu0 %v56_v25 }
  0x34   :  { %617 = vmatpush.xpose.msra.mxu1 %v56_v25  ;;  %618 = vmatpush.xpose.msra.mxu2 %v56_v25 }
  0x35   :  { %619 = vmatpush.xpose.msra.mxu3 %v56_v25 }
  0x37   :  { %80 = vmatpush.xpose.msra.mxu0 %v55_v26 }
  0x38   :  { %620 = vmatpush.xpose.msra.mxu1 %v55_v26  ;;  %621 = vmatpush.xpose.msra.mxu2 %v55_v26 }
  0x39   :  { %622 = vmatpush.xpose.msra.mxu3 %v55_v26 }
  0x3b   :  { %81 = vmatpush.xpose.msra.mxu0 %v54_v28 }
  0x3c   :  { %623 = vmatpush.xpose.msra.mxu1 %v54_v28  ;;  %624 = vmatpush.xpose.msra.mxu2 %v54_v28 }
  0x3d   :  { %625 = vmatpush.xpose.msra.mxu3 %v54_v28 }
  0x3f   :  { %82 = vmatpush.xpose.msra.mxu0 %v53_v29 }
  0x40   :  { %626 = vmatpush.xpose.msra.mxu1 %v53_v29  ;;  %627 = vmatpush.xpose.msra.mxu2 %v53_v29 }
  0x41   :  { %628 = vmatpush.xpose.msra.mxu3 %v53_v29  ;;  %v295_v29 = vadd.s32 64, %v868_v56 }
  0x43   :  { %83 = vmatpush.xpose.msra.mxu0 %v52_v31  ;;  %vm330_vm6 = vcmp.eq.s32.totalorder %v295_v29, %v870_v57 }
  0x44   :  { %629 = vmatpush.xpose.msra.mxu1 %v52_v31  ;;  %630 = vmatpush.xpose.msra.mxu2 %v52_v31 }
  0x45   :  { %631 = vmatpush.xpose.msra.mxu3 %v52_v31 }
  0x46   :  { %84 = vmatmul.f32.vlgmr.msra.gmra.mxu0 %v36_v32 }
  0x47   :  { %96 = vmatmul.f32.vlgmr.msra.gmra.mxu1 %v40_v33  ;;  %108 = vmatmul.f32.vlgmr.msra.gmra.mxu2 %v44_v34 }
  0x48   :  { %120 = vmatmul.f32.vlgmr.msra.gmra.mxu3 %v48_v35 }
  0x4e   :  { %87 = vmatmul.f32.gmra.mxu0 %v37_v37 }
  0x4f   :  { %99 = vmatmul.f32.gmra.mxu1 %v41_v38  ;;  %111 = vmatmul.f32.gmra.mxu2 %v45_v39 }
  0x50   :  { %123 = vmatmul.f32.gmra.mxu3 %v49_v40 }
  0x56   :  { %90 = vmatmul.f32.gmra.mxu0 %v38_v41 }
  0x57   :  { %102 = vmatmul.f32.gmra.mxu1 %v42_v42  ;;  %114 = vmatmul.f32.gmra.mxu2 %v46_v43  ;;  %v296_v43 = vadd.s32 72, %v868_v56 }
  0x58   :  { %126 = vmatmul.f32.gmra.mxu3 %v50_v44  ;;  %v288_v44 = vadd.s32 8, %v868_v56 }
  0x59   :  { %vm331_vm7 = vcmp.eq.s32.totalorder %v296_v43, %v870_v57 }
  0x5a   :  { %vm323_vm8 = vcmp.eq.s32.totalorder %v288_v44, %v870_v57  ;;  %v290_v44 = vadd.s32 24, %v868_v56 }
  0x5c   :  { %vm325_vm15 = vcmp.eq.s32.totalorder %v290_v44, %v870_v57 }
  0x5e   :  { %93 = vmatmul.f32.gmra.mxu0 %v39_v45 }
  0x5f   :  { %105 = vmatmul.f32.gmra.mxu1 %v43_v46  ;;  %117 = vmatmul.f32.gmra.mxu2 %v47_v47 }
  0x60   :  { %129 = vmatmul.f32.gmra.mxu3 %v51_v48 }
  0x67   :  { %v172_v51 = vpop.permute.xlu2 %171 }
  0x6f   :  { %v177_v55 = vpop.permute.xlu2 %176 }
  0x77   :  { %v192_v3 = vpop.permute.xlu2 %191 }
  0x7b   :  { %v152_v49 = vpop.permute.xlu0 %151 }
  0x7c   :  { %v866_v53 = vpop.permute.xlu1 %161 }
  0x7f   :  { %v207_v21 = vpop.permute.xlu2 %206 }
  0x83   :  { %v157_v50 = vpop.permute.xlu0 %156 }
  0x84   :  { %v875_v60 = vpop.permute.xlu1 %166 }
  0x87   :  { %v222_v36 = vpop.permute.xlu2 %221 }
  0x8b   :  { %v864_v52 = vpop.permute.xlu0 %181 }
  0x8c   :  { %v909_v11 = vpop.permute.xlu1 %186 }
  0x93   :  { %v197_v59 = vpop.permute.xlu0 %196 }
  0x94   :  { %v927_v30 = vpop.permute.xlu1 %201 }
  0x9b   :  { %v212_v10 = vpop.permute.xlu0 %211 }
  0x9c   :  { %v217_v46 = vpop.permute.xlu1 %216 }
  0xc3   :  { %v85_v62 = vpop.f32.mrf.mxu0 }
  0xc4   :  { %v97_v63 = vpop.f32.mrf.mxu1  ;;  %v229_v0 = vmul.f32 %v152_v49, %v85_v62 }
  0xc5   :  { %v233_v1 = vmul.f32 %v172_v51, %v97_v63 }
  0xc6   :  { %v249_v4 = vmul.f32 %v882_v61, %v229_v0 }
  0xc7   :  { %v253_v5 = vmul.f32 %v882_v61, %v233_v1 }
  0xc8   :  { %v903_v9 = vadd.f32 %v887_v2, %v249_v4 }
  0xc9   :  { %v900_v8 = vadd.f32 %v887_v2, %v253_v5  ;;  %v292_v5 = vadd.s32 40, %v868_v56 }
  0xca   :  { %v109_v12 = vpop.f32.mrf.mxu2  ;;  %386 = vmax.xlane.f32.xlu2 %v903_v9  ;;  %v338_v14 = vsel %vm322_vm1, %v903_v9, 0.0 }
  0xcb   :  { %v121_v13 = vpop.f32.mrf.mxu3  ;;  %394 = vmax.xlane.f32.xlu0 %v900_v8  ;;  %354 = vadd.xlane.f32.xlu1 %v338_v14  ;;  %v237_v18 = vmul.f32 %v192_v3, %v109_v12  ;;  %v88_v20 = vpop.f32.mrf.mxu0  ;;  %v342_v28 = vsel %vm326_vm5, %v900_v8, 0.0  ;;  %v300_v14 = vadd.s32 104, %v868_v56  ;;  %vm327_vm9 = vcmp.eq.s32.totalorder %v292_v5, %v870_v57 }
  0xcc   :  { %v241_v16 = vmul.f32 %v212_v10, %v121_v13  ;;  %v230_v23 = vmul.f32 %v157_v50, %v88_v20  ;;  %v100_v34 = vpop.f32.mrf.mxu1  ;;  %v289_v10 = vadd.s32 16, %v868_v56 }
  0xcd   :  { %v257_v24 = vmul.f32 %v882_v61, %v237_v18  ;;  %v234_v37 = vmul.f32 %v177_v55, %v100_v34  ;;  %v227_v55 = vpop.permute.xlu0 %226  ;;  %vm335_vm11 = vcmp.eq.s32.totalorder %v300_v14, %v870_v57  ;;  %v297_v34 = vadd.s32 80, %v868_v56 }
  0xce   :  { %v261_v19 = vmul.f32 %v882_v61, %v241_v16  ;;  %v250_v31 = vmul.f32 %v882_v61, %v230_v23  ;;  %vm324_vm10 = vcmp.eq.s32.totalorder %v289_v10, %v870_v57 }
  0xcf   :  { %v931_v32 = vadd.f32 %v887_v2, %v257_v24  ;;  %v254_v47 = vmul.f32 %v882_v61, %v234_v37  ;;  %vm332_vm13 = vcmp.eq.s32.totalorder %v297_v34, %v870_v57 }
  0xd0   :  { %v919_v22 = vadd.f32 %v887_v2, %v261_v19  ;;  %v935_v35 = vadd.f32 %v887_v2, %v250_v31 }
  0xd1   :  { %v346_v40 = vsel %vm330_vm6, %v931_v32, 0.0 }
  0xd2   :  { %v350_v25 = vsel %vm334_vm4, %v919_v22, 0.0  ;;  %v112_v26 = vpop.f32.mrf.mxu2  ;;  %410 = vmax.xlane.f32.xlu2 %v919_v22  ;;  %v339_v0 = vsel %vm323_vm8, %v935_v35, 0.0 }
  0xd3   :  { %v124_v27 = vpop.f32.mrf.mxu3  ;;  %378 = vadd.xlane.f32.xlu0 %v350_v25  ;;  %362 = vadd.xlane.f32.xlu1 %v342_v28  ;;  %v238_v33 = vmul.f32 %v197_v59, %v112_v26  ;;  %v91_v39 = vpop.f32.mrf.mxu0  ;;  %v293_v26 = vadd.s32 48, %v868_v56 }
  0xd4   :  { %v231_v49 = vmul.f32 %v866_v53, %v91_v39  ;;  %v242_v51 = vmul.f32 %v217_v46, %v124_v27  ;;  %v103_v59 = vpop.f32.mrf.mxu1  ;;  %v958_v53 = vadd.f32 %v887_v2, %v254_v47 }
  0xd5   :  { %v258_v38 = vmul.f32 %v882_v61, %v238_v33  ;;  %v235_v15 = vmul.f32 %v864_v52, %v103_v59  ;;  %vm328_vm12 = vcmp.eq.s32.totalorder %v293_v26, %v870_v57 }
  0xd6   :  { %v251_v62 = vmul.f32 %v882_v61, %v231_v49  ;;  %v262_v1 = vmul.f32 %v882_v61, %v242_v51  ;;  %v343_v23 = vsel %vm327_vm9, %v958_v53, 0.0 }
  0xd7   :  { %v945_v48 = vadd.f32 %v887_v2, %v258_v38 }
  0xd8   :  { %v967_v16 = vadd.f32 %v887_v2, %v251_v62  ;;  %v972_v19 = vadd.f32 %v887_v2, %v262_v1 }
  0xd9   :  { %v347_v63 = vsel %vm331_vm7, %v945_v48, 0.0 }
  0xda   :  { %v115_v41 = vpop.f32.mrf.mxu2  ;;  %370 = vadd.xlane.f32.xlu2 %v346_v40  ;;  %v340_v24 = vsel %vm324_vm10, %v967_v16, 0.0  ;;  %v351_v25 = vsel %vm335_vm11, %v972_v19, 0.0 }
  0xdb   :  { %v127_v42 = vpop.f32.mrf.mxu3  ;;  %388 = vmax.xlane.f32.xlu0 %v935_v35  ;;  %402 = vmax.xlane.f32.xlu1 %v931_v32  ;;  %v239_v28 = vmul.f32 %v927_v30, %v115_v41  ;;  %v294_v41 = vadd.s32 56, %v868_v56 }
  0xdc   :  { %v243_v45 = vmul.f32 %v222_v36, %v127_v42  ;;  %v106_v33 = vpop.f32.mrf.mxu1  ;;  %v94_v36 = vpop.f32.mrf.mxu0 }
  0xdd   :  { %v259_v31 = vmul.f32 %v882_v61, %v239_v28  ;;  %v236_v37 = vmul.f32 %v909_v11, %v106_v33  ;;  %v232_v30 = vmul.f32 %v875_v60, %v94_v36  ;;  %vm329_vm14 = vcmp.eq.s32.totalorder %v294_v41, %v870_v57 }
  0xde   :  { %v263_v50 = vmul.f32 %v882_v61, %v243_v45 }
  0xdf   :  { %v1000_v38 = vadd.f32 %v887_v2, %v259_v31  ;;  %v256_v39 = vmul.f32 %v882_v61, %v236_v37  ;;  %v252_v11 = vmul.f32 %v882_v61, %v232_v30 }
  0xe0   :  { %v952_v54 = vadd.f32 %v887_v2, %v263_v50 }
  0xe1   :  { %v348_v40 = vsel %vm332_vm13, %v1000_v38, 0.0  ;;  %v1011_v42 = vadd.f32 %v887_v2, %v256_v39  ;;  %v1015_v60 = vadd.f32 %v887_v2, %v252_v11 }
  0xe2   :  { %v118_v3 = vpop.f32.mrf.mxu2  ;;  %356 = vadd.xlane.f32.xlu2 %v339_v0 }
  0xe3   :  { %v130_v4 = vpop.f32.mrf.mxu3  ;;  %372 = vadd.xlane.f32.xlu0 %v347_v63  ;;  %v240_v12 = vmul.f32 %v207_v21, %v118_v3  ;;  %396 = vmax.xlane.f32.xlu1 %v958_v53  ;;  %v255_v21 = vmul.f32 %v882_v61, %v235_v15  ;;  %v345_v43 = vsel %vm329_vm14, %v1011_v42, 0.0 }
  0xe4   :  { %v244_v13 = vmul.f32 %v227_v55, %v130_v4 }
  0xe5   :  { %v260_v17 = vmul.f32 %v882_v61, %v240_v12  ;;  %v989_v27 = vadd.f32 %v887_v2, %v255_v21 }
  0xe6   :  { %v264_v18 = vmul.f32 %v882_v61, %v244_v13  ;;  %v341_v61 = vsel %vm325_vm15, %v1015_v60, 0.0 }
  0xe7   :  { %v978_v20 = vadd.f32 %v887_v2, %v260_v17  ;;  %v344_v29 = vsel %vm328_vm12, %v989_v27, 0.0 }
  0xe8   :  { %v981_v52 = vadd.f32 %v887_v2, %v264_v18  ;;  %v352_v2 = vsel %vm336_vm0, %v952_v54, 0.0  ;;  %vm562_vm0 = vcmask 7168  }
  0xe9   :  { %v349_v56 = vsel %vm333_vm2, %v978_v20, 0.0 }
  0xea   :  { %364 = vadd.xlane.f32.xlu2 %v343_v23 }
  0xeb   :  { %358 = vadd.xlane.f32.xlu0 %v340_v24  ;;  %380 = vadd.xlane.f32.xlu1 %v351_v25 }
  0xf2   :  { %404 = vmax.xlane.f32.xlu2 %v945_v48 }
  0xf3   :  { %366 = vadd.xlane.f32.xlu0 %v344_v29  ;;  %390 = vmax.xlane.f32.xlu1 %v967_v16 }
  0xfa   :  { %398 = vmax.xlane.f32.xlu2 %v989_v27 }
  0xfb   :  { %406 = vmax.xlane.f32.xlu0 %v1000_v38  ;;  %374 = vadd.xlane.f32.xlu1 %v348_v40 }
 0x102   :  { %392 = vmax.xlane.f32.xlu2 %v1015_v60 }
 0x103   :  { %400 = vmax.xlane.f32.xlu0 %v1011_v42  ;;  %368 = vadd.xlane.f32.xlu1 %v345_v43 }
 0x10a   :  { %360 = vadd.xlane.f32.xlu2 %v341_v61 }
 0x10b   :  { %412 = vmax.xlane.f32.xlu0 %v972_v19  ;;  %408 = vmax.xlane.f32.xlu1 %v978_v20 }
 0x112   :  { %416 = vmax.xlane.f32.xlu2 %v981_v52 }
 0x113   :  { %382 = vadd.xlane.f32.xlu0 %v352_v2  ;;  %414 = vmax.xlane.f32.xlu1 %v952_v54 }
 0x11a   :  { %376 = vadd.xlane.f32.xlu2 %v349_v56 }
 0x13d   :  { %v1037_v46 = vpop.xlane.xlu2 %386 }
 0x13e   :  { %v1035_v45 = vpop.xlane.xlu0 %394  ;;  %v418_v58 = vsub.f32 %v903_v9, %v1037_v46  ;;  %v1043_v49 = vpop.xlane.xlu1 %354 }
 0x13f   :  { %v422_v47 = vsub.f32 %v900_v8, %v1035_v45 }
 0x140   :  { %v434_v51 = vmul.f32 1.442695, %v418_v58 }
 0x141   :  { %v442_v50 = vmul.f32 1.442695, %v422_v47 }
 0x143   :  { %641 = vpow2.f32 %v442_v50 }
 0x144   :  { %643 = vpow2.f32 %v434_v51 }
 0x145   :  { %v1047_v6 = vpop.xlane.xlu2 %410 }
 0x146   :  { %v1045_v55 = vpop.xlane.xlu0 %378  ;;  %v430_v59 = vsub.f32 %v919_v22, %v1047_v6  ;;  %v1051_v62 = vpop.xlane.xlu1 %362 }
 0x148   :  { %v458_v8 = vmul.f32 1.442695, %v430_v59 }
 0x149   :  { %v642_v63 = vpop.eup %641 }
 0x14a   :  { %v644_v0 = vpop.eup %643  ;;  %474 = vadd.xlane.f32.xlu2 %v642_v63  ;;  %645 = vpow2.f32 %v458_v8 }
 0x14b   :  { %466 = vadd.xlane.f32.xlu1 %v644_v0 }
 0x14d   :  { %v1053_v9 = vpop.xlane.xlu2 %370 }
 0x14e   :  { %v1055_v1 = vpop.xlane.xlu0 %388  ;;  %v1059_v4 = vpop.xlane.xlu1 %402 }
 0x14f   :  { %v419_v3 = vsub.f32 %v935_v35, %v1055_v1  ;;  %v426_v22 = vsub.f32 %v931_v32, %v1059_v4 }
 0x150   :  { %v646_v5 = vpop.eup %645 }
 0x151   :  { %v436_v10 = vmul.f32 1.442695, %v419_v3  ;;  %v450_v12 = vmul.f32 1.442695, %v426_v22 }
 0x153   :  { %647 = vpow2.f32 %v436_v10  ;;  %490 = vadd.xlane.f32.xlu1 %v646_v5 }
 0x154   :  { %649 = vpow2.f32 %v450_v12 }
 0x155   :  { %v1065_v14 = vpop.xlane.xlu2 %356 }
 0x156   :  { %v1063_v13 = vpop.xlane.xlu0 %372  ;;  %v1067_v15 = vpop.xlane.xlu1 %396 }
 0x157   :  { %v423_v35 = vsub.f32 %v958_v53, %v1067_v15 }
 0x159   :  { %v648_v17 = vpop.eup %647  ;;  %v444_v21 = vmul.f32 1.442695, %v423_v35 }
 0x15a   :  { %v650_v18 = vpop.eup %649  ;;  %468 = vadd.xlane.f32.xlu2 %v648_v17 }
 0x15b   :  { %482 = vadd.xlane.f32.xlu0 %v650_v18  ;;  %651 = vpow2.f32 %v444_v21 }
 0x15d   :  { %v1071_v32 = vpop.xlane.xlu2 %364 }
 0x15e   :  { %v1073_v23 = vpop.xlane.xlu0 %358  ;;  %v1075_v24 = vpop.xlane.xlu1 %380 }
 0x161   :  { %v652_v25 = vpop.eup %651 }
 0x163   :  { %476 = vadd.xlane.f32.xlu0 %v652_v25  ;;  %v353_v25 = vsel %vm337_vm3, %v981_v52, 0.0 }
 0x165   :  { %v1077_v26 = vpop.xlane.xlu2 %404 }
 0x166   :  { %v1079_v28 = vpop.xlane.xlu0 %366  ;;  %v427_v53 = vsub.f32 %v945_v48, %v1077_v26  ;;  %v1083_v29 = vpop.xlane.xlu1 %390 }
 0x167   :  { %v420_v31 = vsub.f32 %v967_v16, %v1083_v29 }
 0x168   :  { %v452_v33 = vmul.f32 1.442695, %v427_v53 }
 0x169   :  { %v438_v34 = vmul.f32 1.442695, %v420_v31 }
 0x16a   :  { %653 = vpow2.f32 %v452_v33 }
 0x16b   :  { %655 = vpow2.f32 %v438_v34 }
 0x16d   :  { %v1087_v36 = vpop.xlane.xlu2 %398 }
 0x16e   :  { %v1089_v37 = vpop.xlane.xlu0 %406  ;;  %v424_v30 = vsub.f32 %v989_v27, %v1087_v36  ;;  %v1095_v48 = vpop.xlane.xlu1 %374 }
 0x16f   :  { %v428_v39 = vsub.f32 %v1000_v38, %v1089_v37 }
 0x170   :  { %v654_v40 = vpop.eup %653  ;;  %v446_v41 = vmul.f32 1.442695, %v424_v30 }
 0x171   :  { %v454_v11 = vmul.f32 1.442695, %v428_v39  ;;  %v656_v16 = vpop.eup %655  ;;  %484 = vadd.xlane.f32.xlu1 %v654_v40 }
 0x172   :  { %657 = vpow2.f32 %v446_v41  ;;  %470 = vadd.xlane.f32.xlu0 %v656_v16 }
 0x173   :  { %659 = vpow2.f32 %v454_v11 }
 0x175   :  { %v1099_v44 = vpop.xlane.xlu2 %392 }
 0x176   :  { %v1097_v43 = vpop.xlane.xlu0 %400  ;;  %v421_v38 = vsub.f32 %v1015_v60, %v1099_v44  ;;  %v1105_v61 = vpop.xlane.xlu1 %368 }
 0x177   :  { %v425_v27 = vsub.f32 %v1011_v42, %v1097_v43 }
 0x178   :  { %v658_v2 = vpop.eup %657  ;;  %v440_v47 = vmul.f32 1.442695, %v421_v38 }
 0x179   :  { %v448_v56 = vmul.f32 1.442695, %v425_v27  ;;  %v660_v58 = vpop.eup %659  ;;  %478 = vadd.xlane.f32.xlu1 %v658_v2 }
 0x17a   :  { %486 = vadd.xlane.f32.xlu2 %v660_v58 }
 0x17b   :  { %661 = vpow2.f32 %v448_v56 }
 0x17c   :  { %663 = vpow2.f32 %v440_v47 }
 0x17d   :  { %v1109_v51 = vpop.xlane.xlu2 %360 }
 0x17e   :  { %v1107_v50 = vpop.xlane.xlu0 %412  ;;  %v1113_v59 = vpop.xlane.xlu1 %408 }
 0x17f   :  { %v431_v42 = vsub.f32 %v972_v19, %v1107_v50  ;;  %v429_v60 = vsub.f32 %v978_v20, %v1113_v59 }
 0x181   :  { %v662_v63 = vpop.eup %661  ;;  %v460_v8 = vmul.f32 1.442695, %v431_v42  ;;  %v456_v3 = vmul.f32 1.442695, %v429_v60 }
 0x182   :  { %v664_v0 = vpop.eup %663  ;;  %480 = vadd.xlane.f32.xlu2 %v662_v63 }
 0x183   :  { %665 = vpow2.f32 %v460_v8  ;;  %472 = vadd.xlane.f32.xlu1 %v664_v0 }
 0x184   :  { %667 = vpow2.f32 %v456_v3 }
 0x185   :  { %v1117_v22 = vpop.xlane.xlu2 %416 }
 0x186   :  { %v433_v5 = vsub.f32 %v981_v52, %v1117_v22  ;;  %v1121_v10 = vpop.xlane.xlu1 %414  ;;  %v1131_v39 = vpop.xlane.xlu0 %382 }
 0x187   :  { %v432_v19 = vsub.f32 %v952_v54, %v1121_v10 }
 0x188   :  { %v464_v20 = vmul.f32 1.442695, %v433_v5 }
 0x189   :  { %v666_v12 = vpop.eup %665  ;;  %v462_v17 = vmul.f32 1.442695, %v432_v19 }
 0x18a   :  { %v668_v35 = vpop.eup %667  ;;  %669 = vpow2.f32 %v464_v20  ;;  %492 = vadd.xlane.f32.xlu2 %v666_v12 }
 0x18b   :  { %488 = vadd.xlane.f32.xlu0 %v668_v35  ;;  %671 = vpow2.f32 %v462_v17 }
 0x18d   :  { %v1129_v53 = vpop.xlane.xlu2 %376 }
 0x190   :  { %v670_v18 = vpop.eup %669 }
 0x191   :  { %v672_v21 = vpop.eup %671  ;;  %496 = vadd.xlane.f32.xlu1 %v670_v18 }
 0x192   :  { %384 = vadd.xlane.f32.xlu2 %v353_v25 }
 0x193   :  { %494 = vadd.xlane.f32.xlu0 %v672_v21 }
 0x1bd   :  { %v475_v54 = vpop.xlane.xlu2 %474 }
 0x1be   :  { %v467_v31 = vpop.xlane.xlu1 %466  ;;  %673 = vlog2.f32 %v475_v54 }
 0x1bf   :  { %675 = vlog2.f32 %v467_v31 }
 0x1c4   :  { %v674_v33 = vpop.eup %673 }
 0x1c5   :  { %v676_v34 = vpop.eup %675  ;;  %v507_v30 = vmul.f32 0.6931472, %v674_v33 }
 0x1c6   :  { %v499_v40 = vmul.f32 0.6931472, %v676_v34  ;;  %v491_v41 = vpop.xlane.xlu1 %490 }
 0x1c7   :  { %v534_v11 = vadd.f32 %v507_v30, %v1035_v45  ;;  %677 = vlog2.f32 %v491_v41 }
 0x1c8   :  { %v530_v57 = vadd.f32 %v499_v40, %v1037_v46 }
 0x1c9   :  { %v550_v7 = vsub.f32 %v534_v11, %v1051_v62 }
 0x1ca   :  { %v546_v52 = vsub.f32 %v530_v57, %v1043_v49 }
 0x1cb   :  { %567 = vst.msk [vmem:[%s1233_s5 + $0x20] sm:$0xff] %vm562_vm0, %v550_v7 }
 0x1cc   :  { %563 = vst.msk [vmem:[%s1233_s5] sm:$0xff] %vm562_vm0, %v546_v52 }
 0x1cd   :  { %v678_v16 = vpop.eup %677  ;;  %v469_v45 = vpop.xlane.xlu2 %468 }
 0x1ce   :  { %v523_v27 = vmul.f32 0.6931472, %v678_v16  ;;  %679 = vlog2.f32 %v469_v45  ;;  %v483_v38 = vpop.xlane.xlu0 %482 }
 0x1cf   :  { %681 = vlog2.f32 %v483_v38 }
 0x1d0   :  { %v542_v46 = vadd.f32 %v523_v27, %v1047_v6 }
 0x1d2   :  { %v558_v49 = vsub.f32 %v542_v46, %v1045_v55 }
 0x1d4   :  { %v680_v62 = vpop.eup %679  ;;  %575 = vst.msk [vmem:[%s1233_s5 + $0x60] sm:$0xff] %vm562_vm0, %v558_v49 }
 0x1d5   :  { %v682_v2 = vpop.eup %681  ;;  %v501_v56 = vmul.f32 0.6931472, %v680_v62 }
 0x1d6   :  { %v515_v47 = vmul.f32 0.6931472, %v682_v2  ;;  %v477_v58 = vpop.xlane.xlu0 %476 }
 0x1d7   :  { %v531_v42 = vadd.f32 %v501_v56, %v1055_v1  ;;  %683 = vlog2.f32 %v477_v58 }
 0x1d8   :  { %v538_v60 = vadd.f32 %v515_v47, %v1059_v4 }
 0x1d9   :  { %v547_v63 = vsub.f32 %v531_v42, %v1065_v14 }
 0x1da   :  { %v554_v6 = vsub.f32 %v538_v60, %v1053_v9 }
 0x1db   :  { %564 = vst.msk [vmem:[%s1233_s5 + $0x8] sm:$0xff] %vm562_vm0, %v547_v63 }
 0x1dc   :  { %571 = vst.msk [vmem:[%s1233_s5 + $0x40] sm:$0xff] %vm562_vm0, %v554_v6 }
 0x1dd   :  { %v684_v55 = vpop.eup %683 }
 0x1de   :  { %v509_v8 = vmul.f32 0.6931472, %v684_v55 }
 0x1e0   :  { %v535_v1 = vadd.f32 %v509_v8, %v1067_v15 }
 0x1e2   :  { %v551_v4 = vsub.f32 %v535_v1, %v1071_v32 }
 0x1e4   :  { %568 = vst.msk [vmem:[%s1233_s5 + $0x28] sm:$0xff] %vm562_vm0, %v551_v4  ;;  %v485_v9 = vpop.xlane.xlu1 %484 }
 0x1e5   :  { %685 = vlog2.f32 %v485_v9  ;;  %v471_v14 = vpop.xlane.xlu0 %470 }
 0x1e6   :  { %687 = vlog2.f32 %v471_v14 }
 0x1eb   :  { %v686_v0 = vpop.eup %685 }
 0x1ec   :  { %v688_v3 = vpop.eup %687  ;;  %v517_v5 = vmul.f32 0.6931472, %v686_v0  ;;  %v479_v19 = vpop.xlane.xlu1 %478 }
 0x1ed   :  { %v503_v12 = vmul.f32 0.6931472, %v688_v3  ;;  %689 = vlog2.f32 %v479_v19  ;;  %v487_v20 = vpop.xlane.xlu2 %486 }
 0x1ee   :  { %v539_v15 = vadd.f32 %v517_v5, %v1077_v26  ;;  %691 = vlog2.f32 %v487_v20 }
 0x1ef   :  { %v532_v32 = vadd.f32 %v503_v12, %v1083_v29 }
 0x1f0   :  { %v555_v35 = vsub.f32 %v539_v15, %v1063_v13 }
 0x1f1   :  { %v548_v17 = vsub.f32 %v532_v32, %v1073_v23 }
 0x1f2   :  { %572 = vst.msk [vmem:[%s1233_s5 + $0x48] sm:$0xff] %vm562_vm0, %v555_v35 }
 0x1f3   :  { %v690_v18 = vpop.eup %689  ;;  %565 = vst.msk [vmem:[%s1233_s5 + $0x10] sm:$0xff] %vm562_vm0, %v548_v17 }
 0x1f4   :  { %v692_v21 = vpop.eup %691  ;;  %v511_v26 = vmul.f32 0.6931472, %v690_v18 }
 0x1f5   :  { %v519_v25 = vmul.f32 0.6931472, %v692_v21  ;;  %v481_v29 = vpop.xlane.xlu2 %480 }
 0x1f6   :  { %v473_v54 = vpop.xlane.xlu1 %472  ;;  %v536_v13 = vadd.f32 %v511_v26, %v1087_v36 }
 0x1f7   :  { %693 = vlog2.f32 %v473_v54  ;;  %v540_v23 = vadd.f32 %v519_v25, %v1089_v37 }
 0x1f8   :  { %695 = vlog2.f32 %v481_v29  ;;  %v552_v31 = vsub.f32 %v536_v13, %v1079_v28 }
 0x1f9   :  { %v556_v33 = vsub.f32 %v540_v23, %v1095_v48 }
 0x1fa   :  { %569 = vst.msk [vmem:[%s1233_s5 + $0x30] sm:$0xff] %vm562_vm0, %v552_v31 }
 0x1fb   :  { %573 = vst.msk [vmem:[%s1233_s5 + $0x50] sm:$0xff] %vm562_vm0, %v556_v33 }
 0x1fd   :  { %v694_v34 = vpop.eup %693  ;;  %v493_v40 = vpop.xlane.xlu2 %492 }
 0x1fe   :  { %v696_v36 = vpop.eup %695  ;;  %v505_v30 = vmul.f32 0.6931472, %v694_v34  ;;  %v489_v37 = vpop.xlane.xlu0 %488  ;;  %697 = vlog2.f32 %v493_v40 }
 0x1ff   :  { %v513_v41 = vmul.f32 0.6931472, %v696_v36  ;;  %699 = vlog2.f32 %v489_v37 }
 0x200   :  { %v533_v28 = vadd.f32 %v505_v30, %v1099_v44 }
 0x201   :  { %v537_v48 = vadd.f32 %v513_v41, %v1097_v43 }
 0x202   :  { %v549_v11 = vsub.f32 %v533_v28, %v1109_v51 }
 0x203   :  { %v553_v57 = vsub.f32 %v537_v48, %v1105_v61 }
 0x204   :  { %566 = vst.msk [vmem:[%s1233_s5 + $0x18] sm:$0xff] %vm562_vm0, %v549_v11  ;;  %v698_v7 = vpop.eup %697  ;;  %v497_v52 = vpop.xlane.xlu1 %496 }
 0x205   :  { %570 = vst.msk [vmem:[%s1233_s5 + $0x38] sm:$0xff] %vm562_vm0, %v553_v57  ;;  %v700_v44 = vpop.eup %699  ;;  %v525_v16 = vmul.f32 0.6931472, %v698_v7  ;;  %701 = vlog2.f32 %v497_v52  ;;  %v385_v2 = vpop.xlane.xlu2 %384 }
 0x206   :  { %v495_v43 = vpop.xlane.xlu0 %494  ;;  %v521_v45 = vmul.f32 0.6931472, %v700_v44 }
 0x207   :  { %703 = vlog2.f32 %v495_v43  ;;  %v543_v61 = vadd.f32 %v525_v16, %v1107_v50 }
 0x208   :  { %v541_v51 = vadd.f32 %v521_v45, %v1113_v59 }
 0x209   :  { %v559_v27 = vsub.f32 %v543_v61, %v1075_v24 }
 0x20a   :  { %v557_v38 = vsub.f32 %v541_v51, %v1129_v53 }
 0x20b   :  { %v702_v46 = vpop.eup %701  ;;  %576 = vst.msk [vmem:[%s1233_s5 + $0x68] sm:$0xff] %vm562_vm0, %v559_v27 }
 0x20c   :  { %574 = vst.msk [vmem:[%s1233_s5 + $0x58] sm:$0xff] %vm562_vm0, %v557_v38  ;;  %v529_v62 = vmul.f32 0.6931472, %v702_v46 }
 0x20d   :  { %v704_v49 = vpop.eup %703 }
 0x20e   :  { %v527_v50 = vmul.f32 0.6931472, %v704_v49  ;;  %v545_v59 = vadd.f32 %v529_v62, %v1117_v22 }
 0x210   :  { %v544_v24 = vadd.f32 %v527_v50, %v1121_v10  ;;  %v561_v53 = vsub.f32 %v545_v59, %v385_v2 }
 0x212   :  { %v560_v56 = vsub.f32 %v544_v24, %v1131_v39  ;;  %578 = vst.msk [vmem:[%s1233_s5 + $0x78] sm:$0xff] %vm562_vm0, %v561_v53 }
 0x214   :  { %577 = vst.msk [vmem:[%s1233_s5 + $0x70] sm:$0xff] %vm562_vm0, %v560_v56 }
 0x215   :  { %583 = vsyncpa [#allocation3], 1 }

</bundles_post_ra>
